<compile_context>
chip_gen: v5e
topology: v5e:2x2
jax: 0.10.0
libtpu: 0.0.40
codegen_flags: <defaults>
</compile_context>

<pallas_src>
import functools
import math

import jax
import jax.numpy as jnp
from jax import lax
from jax.experimental import pallas as pl
from jax.experimental.pallas import tpu as pltpu


def _highway_kernel(xs_ref, w_ref, b_ref, o_ref, *, n, k0, chunks, carry):
    """Fused highway forward for `chunks` 128-lane groups (k0 problems each).

    xs_ref: (N, chunks*128)  lane-stacked, row-major problems: xs[b, g*N+d] = x_g[b, d]
    w_ref : (N, N)           nn.Linear weight (out, in), resident across grid steps
    b_ref : (N, 1)           bias as a column, resident
    o_ref : (N, chunks*128)  output in the per-problem-transposed frame:
                             o[j, g*N + i] = out_g[i, j]
    """
    w = w_ref[...]                                        # hoisted: (N, N)
    bcol = jnp.broadcast_to(b_ref[...], (n, 128))         # hoisted lane-broadcast of bias

    # Static unroll over 128-lane chunks: bounds vreg live ranges per chunk and
    # keeps every load/store a full-width (N, 128) access.
    for c in range(chunks):
        lo = c * 128
        X = xs_ref[:, lo:lo + 128]                        # (N, 128), k0 problems row-major
        B = jnp.tanh(X)                                   # t_g (row-major frame), EUP
        A = (B * X) if carry else ((1.0 - B) * X)         # gating_g (row-major frame), VPU

        # f_g.T for each problem in the chunk: f_g.T[d', b] = sum_d W[d', d] * x_g[b, d]
        # -> contract-last-dims dot_general (the supported q @ k.T MXU pattern),
        #    no transposes and no block-diagonal weight needed.
        pieces = []
        for p in range(k0):
            xg = X[:, p * n:(p + 1) * n]                  # (N, N) value slice
            ft = lax.dot_general(
                w, xg,
                dimension_numbers=(((1,), (1,)), ((), ())),
                preferred_element_type=jnp.float32,
            )                                             # (N, N): ft[d', b] = f_g[b, d'] - bias[d']
            pieces.append(ft)
        C = pieces[0] if k0 == 1 else jnp.concatenate(pieces, axis=-1)   # (N, 128)

        # o[j, g*N + i] = gating_g[j, i] + t_g[j, i] * f_g[i, j]
        o_ref[:, lo:lo + 128] = (A + B * (C + bcol)).astype(o_ref.dtype)


def _choose_chunks_per_step(total_chunks, n, itemsize):
    """Pick 128-lane chunks per grid step: big blocks, but keep several steps."""
    MAX_CHUNKS = 16            # bounds static unroll and per-stream block bytes
    MAX_BLOCK_BYTES = 2 << 20  # ~2 MiB / stream / step; x2 streams x2 buffers << v7x VMEM budget
    MIN_STEPS = 8              # prefer >= 8 grid steps (v7x 2-TC sharding + pipelining)

    best = 1
    for d in range(1, total_chunks + 1):
        if total_chunks % d:
            continue
        if d > MAX_CHUNKS or n * d * 128 * itemsize > MAX_BLOCK_BYTES:
            break
        if total_chunks // d >= MIN_STEPS:
            best = d
    if best == 1 and total_chunks <= MIN_STEPS:
        # Tiny problem: per-step overhead dominates -> fewer, larger steps, but
        # keep >= 2 steps so v7x can still split across both TensorCores.
        for d in range(1, total_chunks + 1):
            if total_chunks % d:
                continue
            if d > MAX_CHUNKS or n * d * 128 * itemsize > MAX_BLOCK_BYTES:
                break
            if total_chunks // d >= 2 or total_chunks == 1:
                best = d
    return best


def highway_layer(x, weight, bias, *, carry: bool = False, unstack_output: bool = True):
    """Batched HighwayLayer forward.

    x:      (G, N, N) -- G independent inputs, each (batch=N, features=N);
            a single (N, N) input is also accepted (the PyTorch reference only
            type-checks when batch == in_features == out_features).
    weight: (N, N) nn.Linear weight in (out, in) layout.
    bias:   (N,)
    Returns (G, N, N) (or (N, N)), each slice equal to `gating.T + t.T * f`.
    With unstack_output=False the raw lane-stacked slab (N, Gp*N) is returned
    (o[j, g*N + i] = out[g][i, j]) and the final wrapper transpose is skipped.
    """
    squeeze = (x.ndim == 2)
    if squeeze:
        x = x[None]
    G, B, D = x.shape
    assert B == D, "reference PyTorch module only type-checks when batch == features"
    N = D
    assert weight.shape == (N, N) and bias.shape == (N,)
    # Contract that keeps every block a whole number of 128-lane chunks.
    # TODO(synk): pad the feature dim (zero-padded W/bias columns) for N that
    # does not divide 128, and add a >=128 tiled bf16 path for large N.
    assert 128 % N == 0, f"kernel path requires 128 % N == 0, got N={N}"
    k0 = 128 // N

    out_dtype = jnp.result_type(x.dtype, weight.dtype, bias.dtype)

    # Pad the problem count so every 128-lane chunk holds k0 full problems.
    Gp = -(-G // k0) * k0
    if Gp != G:
        x = jnp.concatenate([x, jnp.zeros((Gp - G, N, N), x.dtype)], axis=0)

    total_chunks = (Gp * N) // 128
    cps = _choose_chunks_per_step(total_chunks, N, jnp.dtype(out_dtype).itemsize)
    L = cps * 128
    grid = (total_chunks // cps,)

    # The single wrapper-side layout pass on the input: lane-stacked row-major slab.
    xs = jnp.transpose(x, (1, 0, 2)).reshape(N, Gp * N).astype(out_dtype)
    w = weight.astype(out_dtype)
    b_col = bias.astype(out_dtype).reshape(N, 1)

    kernel = functools.partial(_highway_kernel, n=N, k0=k0, chunks=cps, carry=carry)
    vmem = pltpu.MemorySpace.VMEM

    o_slab = pl.pallas_call(
        kernel,
        grid=grid,
        in_specs=[
            pl.BlockSpec((N, L), lambda i: (0, i), memory_space=vmem),   # streamed x slab
            pl.BlockSpec((N, N), lambda i: (0, 0), memory_space=vmem),   # resident weight
            pl.BlockSpec((N, 1), lambda i: (0, 0), memory_space=vmem),   # resident bias column
        ],
        out_specs=pl.BlockSpec((N, L), lambda i: (0, i), memory_space=vmem),
        out_shape=jax.ShapeDtypeStruct((N, Gp * N), out_dtype),
        compiler_params=pltpu.CompilerParams(
            dimension_semantics=("parallel",),   # independent steps; v7x 2-TC sharding
        ),
    )(xs, w, b_col)

    if not unstack_output:
        return o_slab

    # Unstack the per-problem-transposed slab back to (G, N, N): one XLA pass.
    o3 = o_slab.reshape(N, Gp, N)                 # o3[j, g, i] = out[g][i, j]
    out = jnp.transpose(o3, (1, 2, 0))[:G]        # -> [g, i, j]
    return out[0] if squeeze else out


def highway_layer_ref(x, weight, bias, *, carry: bool = False):
    """Pure-JAX reference mirroring the PyTorch forward exactly (square path)."""
    def one(xg):
        t = jnp.tanh(xg)
        f = xg @ weight.T + bias
        gating = (t * xg) if carry else ((1.0 - t) * xg)
        return gating.T + t.T * f
    if x.ndim == 2:
        return one(x)
    return jax.vmap(one)(x)


if __name__ == "__main__":
    N = 32   # batch == in_features == out_features (square reference path)
    G = 64   # independent problems -> 16 chunks -> grid of 8 steps, (32, 256) blocks

    key = jax.random.PRNGKey(0)
    kx, kw, kb = jax.random.split(key, 3)

    x = jax.random.normal(kx, (G, N, N), dtype=jnp.float32)

    # nn.Linear default init: U(-1/sqrt(fan_in), 1/sqrt(fan_in))
    bound = 1.0 / math.sqrt(N)
    weight = jax.random.uniform(kw, (N, N), jnp.float32, -bound, bound)
    bias = jax.random.uniform(kb, (N,), jnp.float32, -bound, bound)

    for carry in (False, True):
        out = jax.block_until_ready(highway_layer(x, weight, bias, carry=carry))
        ref = highway_layer_ref(x, weight, bias, carry=carry)
        assert out.shape == (G, N, N)
        err = float(jnp.max(jnp.abs(out - ref)))
        assert jnp.allclose(out, ref, atol=1e-4, rtol=1e-4), (
            f"mismatch (carry={carry}), max abs err {err}")

    # Single (N, N) input -- the module's actual call signature; exercises the
    # squeeze path and zero-padding of the problem count to one 128-lane chunk.
    x1 = jax.random.normal(kx, (N, N), dtype=jnp.float32)
    out1 = jax.block_until_ready(highway_layer(x1, weight, bias))
    ref1 = highway_layer_ref(x1, weight, bias)
    assert out1.shape == (N, N)
    assert jnp.allclose(out1, ref1, atol=1e-4, rtol=1e-4), "mismatch (single input)"

    print("KERNEL_OK")
</pallas_src>

<mosaic_0001>
module attributes {stable_mosaic.version = 11 : i64} {
  func.func @_highway_kernel(%arg0: i32, %arg1: memref<32x256xf32, #tpu.memory_space<vmem>>, %arg2: memref<32x32xf32, #tpu.memory_space<vmem>>, %arg3: memref<32x1xf32, #tpu.memory_space<vmem>>, %arg4: memref<32x256xf32, #tpu.memory_space<vmem>>) attributes {dimension_semantics = [#tpu.dimension_semantics<parallel>], iteration_bounds = array<i64: 8>, scalar_prefetch = 0 : i64, scratch_operands = 0 : i64, tpu.core_type = #tpu.core_type<tc>, window_params = [{transform_indices = @transform_0, window_bounds = array<i64: 32, 256>}, {pipeline_mode = #tpu.pipeline_mode<synchronous>, transform_indices = @transform_1, window_bounds = array<i64: 32, 32>}, {pipeline_mode = #tpu.pipeline_mode<synchronous>, transform_indices = @transform_2, window_bounds = array<i64: 32, 1>}, {transform_indices = @transform_3, window_bounds = array<i64: 32, 256>}]} {
    %c0 = arith.constant 0 : index
    %c0_0 = arith.constant 0 : index
    %0 = vector.load %arg2[%c0, %c0_0] : memref<32x32xf32, #tpu.memory_space<vmem>>, vector<32x32xf32>
    %c0_1 = arith.constant 0 : index
    %c0_2 = arith.constant 0 : index
    %1 = vector.load %arg3[%c0_1, %c0_2] : memref<32x1xf32, #tpu.memory_space<vmem>>, vector<32x1xf32>
    %2 = vector.shape_cast %1 : vector<32x1xf32> to vector<32x1xf32>
    %3 = vector.broadcast %2 : vector<32x1xf32> to vector<32x128xf32>
    %c0_3 = arith.constant 0 : index
    %c0_4 = arith.constant 0 : index
    %4 = vector.load %arg1[%c0_3, %c0_4] : memref<32x256xf32, #tpu.memory_space<vmem>>, vector<32x128xf32>
    %5 = math.tanh %4 : vector<32x128xf32>
    %cst = arith.constant 1.000000e+00 : f32
    %6 = vector.broadcast %cst : f32 to vector<32x128xf32>
    %7 = arith.subf %6, %5 : vector<32x128xf32>
    %8 = arith.mulf %7, %4 : vector<32x128xf32>
    %9 = vector.extract_strided_slice %4 {offsets = [0, 0], sizes = [32, 32], strides = [1, 1]} : vector<32x128xf32> to vector<32x32xf32>
    %cst_5 = arith.constant dense<0.000000e+00> : vector<32x32xf32>
    %10 = tpu.matmul %0, %9, %cst_5 {dimension_numbers = #tpu.dot_dimension_numbers<[1], [1], [0], [0], [0, 0, 1, 0], [], []>} : vector<32x32xf32>, vector<32x32xf32>, vector<32x32xf32> -> vector<32x32xf32>
    %11 = vector.extract_strided_slice %4 {offsets = [0, 32], sizes = [32, 32], strides = [1, 1]} : vector<32x128xf32> to vector<32x32xf32>
    %cst_6 = arith.constant dense<0.000000e+00> : vector<32x32xf32>
    %12 = tpu.matmul %0, %11, %cst_6 {dimension_numbers = #tpu.dot_dimension_numbers<[1], [1], [0], [0], [0, 0, 1, 0], [], []>} : vector<32x32xf32>, vector<32x32xf32>, vector<32x32xf32> -> vector<32x32xf32>
    %13 = vector.extract_strided_slice %4 {offsets = [0, 64], sizes = [32, 32], strides = [1, 1]} : vector<32x128xf32> to vector<32x32xf32>
    %cst_7 = arith.constant dense<0.000000e+00> : vector<32x32xf32>
    %14 = tpu.matmul %0, %13, %cst_7 {dimension_numbers = #tpu.dot_dimension_numbers<[1], [1], [0], [0], [0, 0, 1, 0], [], []>} : vector<32x32xf32>, vector<32x32xf32>, vector<32x32xf32> -> vector<32x32xf32>
    %15 = vector.extract_strided_slice %4 {offsets = [0, 96], sizes = [32, 32], strides = [1, 1]} : vector<32x128xf32> to vector<32x32xf32>
    %cst_8 = arith.constant dense<0.000000e+00> : vector<32x32xf32>
    %16 = tpu.matmul %0, %15, %cst_8 {dimension_numbers = #tpu.dot_dimension_numbers<[1], [1], [0], [0], [0, 0, 1, 0], [], []>} : vector<32x32xf32>, vector<32x32xf32>, vector<32x32xf32> -> vector<32x32xf32>
    %17 = tpu.concatenate %10, %12, %14, %16 in 1 : vector<32x32xf32>, vector<32x32xf32>, vector<32x32xf32>, vector<32x32xf32> -> vector<32x128xf32>
    %18 = arith.addf %17, %3 : vector<32x128xf32>
    %19 = arith.mulf %5, %18 : vector<32x128xf32>
    %20 = arith.addf %8, %19 : vector<32x128xf32>
    %c0_9 = arith.constant 0 : index
    %c0_10 = arith.constant 0 : index
    %21 = vector.load %arg4[%c0_9, %c0_10] : memref<32x256xf32, #tpu.memory_space<vmem>>, vector<32x128xf32>
    tpu.vector_store %arg4[%c0_9, %c0_10], %20 {strides = array<i32>} : memref<32x256xf32, #tpu.memory_space<vmem>>, vector<32x128xf32>,
    %c0_11 = arith.constant 0 : index
    %c128 = arith.constant 128 : index
    %22 = vector.load %arg1[%c0_11, %c128] : memref<32x256xf32, #tpu.memory_space<vmem>>, vector<32x128xf32>
    %23 = math.tanh %22 : vector<32x128xf32>
    %cst_12 = arith.constant 1.000000e+00 : f32
    %24 = vector.broadcast %cst_12 : f32 to vector<32x128xf32>
    %25 = arith.subf %24, %23 : vector<32x128xf32>
    %26 = arith.mulf %25, %22 : vector<32x128xf32>
    %27 = vector.extract_strided_slice %22 {offsets = [0, 0], sizes = [32, 32], strides = [1, 1]} : vector<32x128xf32> to vector<32x32xf32>
    %cst_13 = arith.constant dense<0.000000e+00> : vector<32x32xf32>
    %28 = tpu.matmul %0, %27, %cst_13 {dimension_numbers = #tpu.dot_dimension_numbers<[1], [1], [0], [0], [0, 0, 1, 0], [], []>} : vector<32x32xf32>, vector<32x32xf32>, vector<32x32xf32> -> vector<32x32xf32>
    %29 = vector.extract_strided_slice %22 {offsets = [0, 32], sizes = [32, 32], strides = [1, 1]} : vector<32x128xf32> to vector<32x32xf32>
    %cst_14 = arith.constant dense<0.000000e+00> : vector<32x32xf32>
    %30 = tpu.matmul %0, %29, %cst_14 {dimension_numbers = #tpu.dot_dimension_numbers<[1], [1], [0], [0], [0, 0, 1, 0], [], []>} : vector<32x32xf32>, vector<32x32xf32>, vector<32x32xf32> -> vector<32x32xf32>
    %31 = vector.extract_strided_slice %22 {offsets = [0, 64], sizes = [32, 32], strides = [1, 1]} : vector<32x128xf32> to vector<32x32xf32>
    %cst_15 = arith.constant dense<0.000000e+00> : vector<32x32xf32>
    %32 = tpu.matmul %0, %31, %cst_15 {dimension_numbers = #tpu.dot_dimension_numbers<[1], [1], [0], [0], [0, 0, 1, 0], [], []>} : vector<32x32xf32>, vector<32x32xf32>, vector<32x32xf32> -> vector<32x32xf32>
    %33 = vector.extract_strided_slice %22 {offsets = [0, 96], sizes = [32, 32], strides = [1, 1]} : vector<32x128xf32> to vector<32x32xf32>
    %cst_16 = arith.constant dense<0.000000e+00> : vector<32x32xf32>
    %34 = tpu.matmul %0, %33, %cst_16 {dimension_numbers = #tpu.dot_dimension_numbers<[1], [1], [0], [0], [0, 0, 1, 0], [], []>} : vector<32x32xf32>, vector<32x32xf32>, vector<32x32xf32> -> vector<32x32xf32>
    %35 = tpu.concatenate %28, %30, %32, %34 in 1 : vector<32x32xf32>, vector<32x32xf32>, vector<32x32xf32>, vector<32x32xf32> -> vector<32x128xf32>
    %36 = arith.addf %35, %3 : vector<32x128xf32>
    %37 = arith.mulf %23, %36 : vector<32x128xf32>
    %38 = arith.addf %26, %37 : vector<32x128xf32>
    %c0_17 = arith.constant 0 : index
    %c128_18 = arith.constant 128 : index
    %39 = vector.load %arg4[%c0_17, %c128_18] : memref<32x256xf32, #tpu.memory_space<vmem>>, vector<32x128xf32>
    tpu.vector_store %arg4[%c0_17, %c128_18], %38 {strides = array<i32>} : memref<32x256xf32, #tpu.memory_space<vmem>>, vector<32x128xf32>,
    return
  }
  func.func @transform_0(%arg0: i32) -> (i32, i32) {
    %c0_i32 = arith.constant 0 : i32
    %c0_i32_0 = arith.constant 0 : i32
    return %c0_i32, %arg0 : i32, i32
  }
  func.func @transform_1(%arg0: i32) -> (i32, i32) {
    %c0_i32 = arith.constant 0 : i32
    %c0_i32_0 = arith.constant 0 : i32
    %c0_i32_1 = arith.constant 0 : i32
    return %c0_i32, %c0_i32_0 : i32, i32
  }
  func.func @transform_2(%arg0: i32) -> (i32, i32) {
    %c0_i32 = arith.constant 0 : i32
    %c0_i32_0 = arith.constant 0 : i32
    %c0_i32_1 = arith.constant 0 : i32
    return %c0_i32, %c0_i32_0 : i32, i32
  }
  func.func @transform_3(%arg0: i32) -> (i32, i32) {
    %c0_i32 = arith.constant 0 : i32
    %c0_i32_0 = arith.constant 0 : i32
    return %c0_i32, %arg0 : i32, i32
  }
}

</mosaic_0001>

<bundles_post_ra>
// kernel: tpu_custom_call.1
= control target key start
LH: loop header
LB: loop body
LE: loop exit
PB: predicated region body
PF: predicated region fallthrough
CT: control target
= control target key end

     0   :  { %8 = vsyncpa [#allocation3], 0  ;;  %s1575_s0 = inlined_call_operand.hbm [shape: f32[32,2048], index: 0, kind: input, shape index: {}]   ;;  %s1576_s1 = inlined_call_operand.vmem [shape: f32[32,32], index: 1, kind: input, shape index: {}]   ;;  %s1577_s2 = inlined_call_operand.vmem [shape: f32[32,1], index: 2, kind: input, shape index: {}]   ;;  %s1578_s3 = inlined_call_operand.hbm [shape: f32[32,2048], index: 3, kind: output, shape index: {}]  }
   0x1   :  { %10 = vsyncpa [#allocation3 + $0x1], 0 }
   0x2   :  { %11 = vsyncpa [#allocation4], 0 }
   0x3   :  { %13 = vsyncpa [#allocation4 + $0x1], 0  ;;  %s1144_s12 = smov 0   ;;  %s1146_s13 = smov 0  }
   0x4   :  { %s1148_s14 = smov 0   ;;  %s1150_s15 = smov 0  }
   0x5 LB: > { %s1165_s16 = sadd.s32 4294967295, %s1112_s15   ;;  %s861_s17 = sadd.s32 4294967294, %s1112_s15   ;;  %s1112_s15 = sphi %s1150_s15, %s1587_s15   ;;  %s1108_s14 = sphi %s1148_s14, %s1586_s14   ;;  %s1104_s13 = sphi %s1146_s13, %s1585_s13   ;;  %s1100_s12 = sphi %s1144_s12, %s1584_s12  }
   0x6   : > { %s1169_s18 = sadd.s32 1, %s1112_s15   ;;  %s26_s19 = sadd.s32 1, %s1108_s14 }
   0x7   : > { %s23_s20 = ssub.s32 %s1112_s15, %s1169_s18  ;;  %p33_p0 = scmp.ne.s32.totalorder %s1108_s14, %s1104_s13 }
   0x8   : > { %p24_p1 = scmp.eq.s32.totalorder %s23_s20, 0  ;;  %p34_p2 = scmp.eq.s32.totalorder %s1112_s15, 0 }
   0x9   : > { %p39_p3 = scmp.ne.s32.totalorder %s1104_s13, %s1100_s12  ;;  %p40_p4 = scmp.eq.s32.totalorder %s1165_s16, 0 }
   0xa   : > { %s1181_s21 = scalar_select %p24_p1, %s1108_s14, %s26_s19  }
   0xb   : > { %p1183_p5 = por %p34_p2, %p33_p0  ;;  %p1187_p6 = por %p40_p4, %p39_p3 }
   0xc   : > { %p105_p7 = scmp.eq.s32.totalorder %s1165_s16, 7  ;;  %p111_p8 = scmp.eq.s32.totalorder %s861_s17, 7 }
   0xd   : > { %p953_p9 = scmp.lt.s32.totalorder %s1112_s15, 8  ;;  %s137_s26 = sand.u32 1, %s1108_s14  }
   0xe   : > { %p1193_p10 = por %p105_p7, %p33_p0  ;;  %p1197_p11 = por %p111_p8, %p39_p3 }
   0xf   : > { %s939_s27 = sshll.u32 %s1112_s15, 4  ;;  %s864_s28 = sshll.u32 %s137_s26, 6 }
  0x10   : > { %s146_s4 = scalar_lea.hbm %s1575_s0, %s939_s27  ;;  %s141_s6 = scalar_lea.vmem [#allocation2], %s864_s28 }
  0x11   : > { %s147_s5 = sshll.u32 %s146_s4, 4  ;;  %s149_s7 = sshll.u32 %s141_s6, 4  ;;  %s148_s5 = int_to_ptr.hbm [resolvable:$true] %s147_s5  ;;  %s150_s7 = int_to_ptr.vmem [resolvable:$true] %s149_s7 }
  0x12   : > { %p1208_p12 = pnand %p953_p9, %p1183_p5  ;;  %p867_p13 = scmp.ge.s32.totalorder %s1112_s15, 1 }
  0x13   : > { %s138_s9 = scalar_lea.sflag [#allocation3], %s137_s26  ;;  %s1016_s10 = sshra.s32 %s148_s5, 4  ;;  %s1017_s10 = int_to_ptr.hbm [resolvable:$true] %s1016_s10 }
  0x14   : > { %s1018_s11 = scalar_lea.hbm %s1017_s10, 64  ;;  %p1020_p1 = pneg %p1208_p12 }
  0x15   : > { %p1019_p0 = scmp.ne.s32.totalorder %s1017_s10, %s1018_s11  ;;  %s1023_s20 = scalar_lea.hbm %s1575_s0, 512 }
  0x16   : > { %p1024_p4 = scmp.lt.s32.totalorder %s1017_s10, %s1575_s0  ;;  %p1025_p5 = scmp.lt.s32.totalorder %s1023_s20, %s1018_s11 }
  0x17   : > { %p1021_p2 = pnand %p1020_p1, %p1019_p0 }
  0x18   : > { %p1026_p7 = por %p1025_p5, %p1024_p4 }
  0x19   : > { %p1022_p3 = pneg %p1021_p2 }
  0x1b   : > { %p1027_p8 = pnand %p1026_p7, %p1022_p3 }
  0x1d   : > { %1030 = shalt.err (!%p1027_p8)
}
  0x1e   : > { %s1114_s26 = smov 2048   ;;  %s1115_s28 = smov 256  }
  0x1f   : > { %s1116_s29 = smov 16   ;;  %p157_p9 = scmp.lt.s32.totalorder %s1112_s15, 9 }
  0x20   : > { %948 = dma.hbm_to_vmem [thread:$0]  (!%p1208_p12), %s148_s5, 1024, %s150_s7, %s138_s9, %s1114_s26, %s1115_s28, %s1116_s29  }
  0x21   : > { %p158_p0 = pnand %p867_p13, %p157_p9 }
  0x22   : > { %s1227_s30 = sand.u32 (!%p158_p0), 1, %s1104_s13  }
  0x23   : > { %161 = sbr.rel (%p158_p0) target bundleno = 505 (0x1f9), region = 32  ;;  %s868_s4 = sshll.u32 (!%p158_p0), %s1227_s30, 6 }
  0x24   : > { %s164_s6 = scalar_lea.sflag (!%p158_p0), [#allocation3], %s1227_s30  ;;  %s1233_s10 = scalar_lea.vmem (!%p158_p0), [#allocation2], %s868_s4 }
  0x28   : > { %1091 = dma.done.wait (%p1187_p6), %s164_s6, 1024  }
  0x29   : > { %1093 = vsyncadd (%p1187_p6), %s164_s6, 4294966272  ;;  %v1240_v0 = vld [vmem:[%s1233_s10 + $0x30] sm:$0xff]  ;;  %v1243_v1 = vld [vmem:[%s1233_s10 + $0x20] sm:$0xff]  ;;  %s1117_s5 = smov 64   ;;  %s1118_s7 = smov 32   ;;  %vm237_vm0 = vcmask 261120  }
  0x2a   : > { %342 = vrot.lane.b32.xlu0 %v1240_v0, %s1117_s5  ;;  %340 = vrot.lane.b32.xlu1 %v1243_v1, %s1117_s5  ;;  %s1119_s23 = smov 96   ;;  %v1256_v2 = vld [vmem:[%s1233_s10 + $0x10] sm:$0xff]  ;;  %v1265_v3 = vld [vmem:[%s1233_s10] sm:$0xff]  ;;  %v1120_v38 = vmov 0   ;;  %vm478_vm1 = vcmask 523264   ;;  %vm483_vm2 = vcmask 785408  }
  0x2b   : > { %385 = vrot.lane.b32.xlu2 %v1243_v1, %s1118_s7  ;;  %v1276_v4 = vld [vmem:[%s1233_s10 + $0x38] sm:$0xff]  ;;  %v1283_v5 = vld [vmem:[%s1233_s10 + $0x28] sm:$0xff]  ;;  %870 = vmatpush.xpose.msk.msra.mxu0 %vm237_vm0, %v1240_v0  ;;  %v1324_v9 = vld [vmem:[%s1576_s1] sm:$0xff]  ;;  %1000 = vtanh.f32 %v1265_v3  ;;  %s773_s20 = scalar_lea.sflag [#allocation4], %s1227_s30  ;;  %s1066_s29 = scalar_lea.hbm %s1578_s3, 512 }
  0x2c   : > { %v1292_v6 = vld [vmem:[%s1233_s10 + $0x18] sm:$0xff]  ;;  %v1301_v7 = vld [vmem:[%s1233_s10 + $0x8] sm:$0xff]  ;;  %v1345_v15 = vld [vmem:[%s1576_s1 + $0x10] sm:$0xff]  ;;  %997 = vset.pattern.permute.xlu0 %v1120_v38  ;;  %998 = vset.pattern.permute.xlu1 %v1120_v38  ;;  %1002 = vtanh.f32 %v1256_v2 }
  0x2d   : > { %v1335_v11 = vld [vmem:[%s1576_s1 + $0x8] sm:$0xff]  ;;  %v1362_v21 = vld [vmem:[%s1576_s1 + $0x18] sm:$0xff]  ;;  %v197_v35 = vld [vmem:[%s1577_s2] sm:$0xff]  ;;  %999 = vset.pattern.permute.xlu2 %v1120_v38  ;;  %1004 = vtanh.f32 %v1243_v1 }
  0x2e   : > { %v198_v36 = vld [vmem:[%s1577_s2 + $0x8] sm:$0xff]  ;;  %v200_v39 = vld [vmem:[%s1577_s2 + $0x18] sm:$0xff]  ;;  %v199_v40 = vld [vmem:[%s1577_s2 + $0x10] sm:$0xff]  ;;  %1006 = vtanh.f32 %v1240_v0 }
  0x2f   : > { %871 = vmatpush.xpose.msk.msra.mxu0 %vm237_vm0, %v1243_v1  ;;  %1008 = vtanh.f32 %v1301_v7 }
  0x30   : > { %1010 = vtanh.f32 %v1292_v6 }
  0x31   : > { %1012 = vtanh.f32 %v1276_v4 }
  0x32   : > { %387 = vrot.lane.b32.xlu0 %v1240_v0, %s1118_s7  ;;  %297 = vrot.lane.b32.xlu1 %v1240_v0, %s1119_s23  ;;  %1014 = vtanh.f32 %v1283_v5 }
  0x33   : > { %338 = vrot.lane.b32.xlu2 %v1256_v2, %s1117_s5  ;;  %872 = vmatpush.xpose.msk.msra.mxu0 %vm237_vm0, %v1256_v2 }
  0x37   : > { %873 = vmatpush.xpose.msk.msra.mxu0 %vm237_vm0, %v1265_v3 }
  0x3a   : > { %295 = vrot.lane.b32.xlu0 %v1243_v1, %s1119_s23  ;;  %383 = vrot.lane.b32.xlu1 %v1256_v2, %s1118_s7 }
  0x3b   : > { %336 = vrot.lane.b32.xlu2 %v1265_v3, %s1117_s5  ;;  %902 = vmatpush.xpose.msk.msrb.mxu0 %vm237_vm0, %v1276_v4 }
  0x3c   : > { %874 = vmatmul.msk.f32.vlgmr.msra.gmra.mxu0 %vm237_vm0, %v1324_v9 }
  0x3f   : > { %903 = vmatpush.xpose.msk.msrb.mxu0 %vm237_vm0, %v1283_v5 }
  0x42   : > { %293 = vrot.lane.b32.xlu0 %v1256_v2, %s1119_s23  ;;  %381 = vrot.lane.b32.xlu1 %v1265_v3, %s1118_s7 }
  0x43   : > { %291 = vrot.lane.b32.xlu2 %v1265_v3, %s1119_s23  ;;  %904 = vmatpush.xpose.msk.msrb.mxu0 %vm237_vm0, %v1292_v6 }
  0x44   : > { %875 = vmatmul.msk.f32.gmra.mxu0 %vm237_vm0, %v1335_v11 }
  0x47   : > { %905 = vmatpush.xpose.msk.msrb.mxu0 %vm237_vm0, %v1301_v7 }
  0x4a   : > { %612 = vrot.lane.b32.xlu0 %v1276_v4, %s1117_s5  ;;  %657 = vrot.lane.b32.xlu1 %v1276_v4, %s1118_s7 }
  0x4b   : > { %610 = vrot.lane.b32.xlu2 %v1283_v5, %s1117_s5 }
  0x4c   : > { %876 = vmatmul.msk.f32.gmra.mxu0 %vm237_vm0, %v1345_v15 }
  0x52   : > { %567 = vrot.lane.b32.xlu0 %v1276_v4, %s1119_s23  ;;  %655 = vrot.lane.b32.xlu1 %v1283_v5, %s1118_s7 }
  0x53   : > { %608 = vrot.lane.b32.xlu2 %v1292_v6, %s1117_s5 }
  0x54   : > { %877 = vmatmul.msk.f32.gmra.mxu0 %vm237_vm0, %v1362_v21 }
  0x5a   : > { %565 = vrot.lane.b32.xlu0 %v1283_v5, %s1119_s23  ;;  %653 = vrot.lane.b32.xlu1 %v1292_v6, %s1118_s7 }
  0x5b   : > { %606 = vrot.lane.b32.xlu2 %v1301_v7, %s1117_s5 }
  0x5c   : > { %906 = vmatmul.msk.f32.vlgmr.msrb.gmra.mxu0 %vm237_vm0, %v1324_v9 }
  0x62   : > { %563 = vrot.lane.b32.xlu0 %v1292_v6, %s1119_s23  ;;  %651 = vrot.lane.b32.xlu1 %v1301_v7, %s1118_s7 }
  0x63   : > { %561 = vrot.lane.b32.xlu2 %v1301_v7, %s1119_s23 }
  0x64   : > { %907 = vmatmul.msk.f32.gmra.mxu0 %vm237_vm0, %v1335_v11 }
  0x6a   : > { %203 = vperm.xlu0 %997, %v197_v35   ;;  %208 = vperm.xlu1 %998, %v198_v36  }
  0x6b   : > { %213 = vperm.xlu2 %999, %v199_v40  }
  0x6c   : > { %908 = vmatmul.msk.f32.gmra.mxu0 %vm237_vm0, %v1345_v15 }
  0x72   : > { %218 = vperm.xlu1 %998, %v200_v39  }
  0x74   : > { %909 = vmatmul.msk.f32.gmra.mxu0 %vm237_vm0, %v1362_v21 }
  0x85   : > { %v386_v8 = vpop.permute.xlu2 %385 }
  0x8d   : > { %v339_v10 = vpop.permute.xlu2 %338 }
  0x95   : > { %v337_v14 = vpop.permute.xlu2 %336 }
  0x9c   : > { %v343_v12 = vpop.permute.xlu0 %342  ;;  %v341_v13 = vpop.permute.xlu1 %340 }
  0x9d   : > { %886 = vmatpush.xpose.msk.msra.mxu2 %vm237_vm0, %v343_v12  ;;  %v292_v18 = vpop.permute.xlu2 %291 }
  0xa1   : > { %887 = vmatpush.xpose.msk.msra.mxu2 %vm237_vm0, %v341_v13 }
  0xa4   : > { %v388_v16 = vpop.permute.xlu0 %387  ;;  %v298_v17 = vpop.permute.xlu1 %297 }
  0xa5   : > { %888 = vmatpush.xpose.msk.msra.mxu2 %vm237_vm0, %v339_v10  ;;  %894 = vmatpush.xpose.msk.msra.mxu3 %vm237_vm0, %v388_v16  ;;  %v611_v22 = vpop.permute.xlu2 %610 }
  0xa6   : > { %878 = vmatpush.xpose.msk.msra.mxu1 %vm237_vm0, %v298_v17 }
  0xa9   : > { %889 = vmatpush.xpose.msk.msra.mxu2 %vm237_vm0, %v337_v14  ;;  %895 = vmatpush.xpose.msk.msra.mxu3 %vm237_vm0, %v386_v8 }
  0xac   : > { %v296_v19 = vpop.permute.xlu0 %295  ;;  %v384_v20 = vpop.permute.xlu1 %383  ;;  %890 = vmatmul.msk.f32.vlgmr.msra.gmra.mxu2 %vm237_vm0, %v1324_v9 }
  0xad   : > { %879 = vmatpush.xpose.msk.msra.mxu1 %vm237_vm0, %v296_v19  ;;  %896 = vmatpush.xpose.msk.msra.mxu3 %vm237_vm0, %v384_v20  ;;  %v609_v25 = vpop.permute.xlu2 %608  ;;  %v1001_v19 = vpop.eup %1000 }
  0xae   : > { %v229_v20 = vsub.f32 1.0, %v1001_v19 }
  0xb4   : > { %v294_v23 = vpop.permute.xlu0 %293  ;;  %v382_v24 = vpop.permute.xlu1 %381  ;;  %891 = vmatmul.msk.f32.gmra.mxu2 %vm237_vm0, %v1335_v11 }
  0xb5   : > { %880 = vmatpush.xpose.msk.msra.mxu1 %vm237_vm0, %v294_v23  ;;  %897 = vmatpush.xpose.msk.msra.mxu3 %vm237_vm0, %v382_v24  ;;  %v607_v30 = vpop.permute.xlu2 %606 }
  0xb8   : > { %898 = vmatmul.msk.f32.vlgmr.msra.gmra.mxu3 %vm237_vm0, %v1324_v9 }
  0xb9   : > { %881 = vmatpush.xpose.msk.msra.mxu1 %vm237_vm0, %v292_v18  ;;  %v279_v13 = vpop.f32.mrf.mxu0 }
  0xbc   : > { %v613_v26 = vpop.permute.xlu0 %612  ;;  %v658_v27 = vpop.permute.xlu1 %657  ;;  %882 = vmatmul.msk.f32.vlgmr.msra.gmra.mxu1 %vm237_vm0, %v1324_v9  ;;  %892 = vmatmul.msk.f32.gmra.mxu2 %vm237_vm0, %v1345_v15 }
  0xbd   : > { %918 = vmatpush.xpose.msk.msrb.mxu2 %vm237_vm0, %v613_v26  ;;  %926 = vmatpush.xpose.msk.msrb.mxu3 %vm237_vm0, %v658_v27  ;;  %v562_v37 = vpop.permute.xlu2 %561  ;;  %v233_v26 = vmul.f32 %v229_v20, %v1265_v3 }
  0xc0   : > { %899 = vmatmul.msk.f32.gmra.mxu3 %vm237_vm0, %v1335_v11 }
  0xc1   : > { %919 = vmatpush.xpose.msk.msrb.mxu2 %vm237_vm0, %v611_v22  ;;  %v282_v17 = vpop.f32.mrf.mxu0 }
  0xc4   : > { %v568_v28 = vpop.permute.xlu0 %567  ;;  %v656_v29 = vpop.permute.xlu1 %655  ;;  %883 = vmatmul.msk.f32.gmra.mxu1 %vm237_vm0, %v1335_v11  ;;  %893 = vmatmul.msk.f32.gmra.mxu2 %vm237_vm0, %v1362_v21 }
  0xc5   : > { %910 = vmatpush.xpose.msk.msrb.mxu1 %vm237_vm0, %v568_v28  ;;  %920 = vmatpush.xpose.msk.msrb.mxu2 %vm237_vm0, %v609_v25 }
  0xc6   : > { %927 = vmatpush.xpose.msk.msrb.mxu3 %vm237_vm0, %v656_v29 }
  0xc8   : > { %900 = vmatmul.msk.f32.gmra.mxu3 %vm237_vm0, %v1345_v15 }
  0xc9   : > { %921 = vmatpush.xpose.msk.msrb.mxu2 %vm237_vm0, %v607_v30  ;;  %v285_v28 = vpop.f32.mrf.mxu0 }
  0xcc   : > { %v566_v31 = vpop.permute.xlu0 %565  ;;  %v654_v32 = vpop.permute.xlu1 %653  ;;  %884 = vmatmul.msk.f32.gmra.mxu1 %vm237_vm0, %v1345_v15  ;;  %922 = vmatmul.msk.f32.vlgmr.msrb.gmra.mxu2 %vm237_vm0, %v1324_v9 }
  0xcd   : > { %911 = vmatpush.xpose.msk.msrb.mxu1 %vm237_vm0, %v566_v31  ;;  %928 = vmatpush.xpose.msk.msrb.mxu3 %vm237_vm0, %v654_v32  ;;  %v1003_v31 = vpop.eup %1002 }
  0xd0   : > { %901 = vmatmul.msk.f32.gmra.mxu3 %vm237_vm0, %v1362_v21 }
  0xd4   : > { %v564_v33 = vpop.permute.xlu0 %563  ;;  %v652_v34 = vpop.permute.xlu1 %651  ;;  %885 = vmatmul.msk.f32.gmra.mxu1 %vm237_vm0, %v1362_v21  ;;  %923 = vmatmul.msk.f32.gmra.mxu2 %vm237_vm0, %v1335_v11 }
  0xd5   : > { %912 = vmatpush.xpose.msk.msrb.mxu1 %vm237_vm0, %v564_v33  ;;  %929 = vmatpush.xpose.msk.msrb.mxu3 %vm237_vm0, %v652_v34  ;;  %v230_v34 = vsub.f32 1.0, %v1003_v31 }
  0xd7   : > { %v234_v38 = vmul.f32 %v230_v34, %v1256_v2 }
  0xd8   : > { %930 = vmatmul.msk.f32.vlgmr.msrb.gmra.mxu3 %vm237_vm0, %v1324_v9 }
  0xd9   : > { %913 = vmatpush.xpose.msk.msrb.mxu1 %vm237_vm0, %v562_v37 }
  0xdc   : > { %914 = vmatmul.msk.f32.vlgmr.msrb.gmra.mxu1 %vm237_vm0, %v1324_v9  ;;  %924 = vmatmul.msk.f32.gmra.mxu2 %vm237_vm0, %v1345_v15  ;;  %v1471_v9 = vpop.permute.xlu2 %213  ;;  %v1475_v12 = vpop.permute.xlu0 %203 }
  0xe0   : > { %931 = vmatmul.msk.f32.gmra.mxu3 %vm237_vm0, %v1335_v11 }
  0xe4   : > { %915 = vmatmul.msk.f32.gmra.mxu1 %vm237_vm0, %v1335_v11  ;;  %925 = vmatmul.msk.f32.gmra.mxu2 %vm237_vm0, %v1362_v21  ;;  %v1473_v11 = vpop.permute.xlu1 %208 }
  0xe8   : > { %932 = vmatmul.msk.f32.gmra.mxu3 %vm237_vm0, %v1345_v15 }
  0xec   : > { %916 = vmatmul.msk.f32.gmra.mxu1 %vm237_vm0, %v1345_v15  ;;  %v1478_v15 = vpop.permute.xlu1 %218 }
  0xf0   : > { %933 = vmatmul.msk.f32.gmra.mxu3 %vm237_vm0, %v1362_v21 }
  0xf4   : > { %917 = vmatmul.msk.f32.gmra.mxu1 %vm237_vm0, %v1362_v21 }
 0x12f   : > { %v369_v41 = vpop.f32.mrf.mxu2 }
 0x130   : > { %446 = vrot.lane.b32.xlu0 %v369_v41, %s1117_s5  ;;  %v1005_v41 = vpop.eup %1004 }
 0x131   : > { %v1007_v2 = vpop.eup %1006 }
 0x137   : > { %v372_v42 = vpop.f32.mrf.mxu2 }
 0x138   : > { %448 = vrot.lane.b32.xlu1 %v372_v42, %s1117_s5  ;;  %v288_v42 = vpop.f32.mrf.mxu0 }
 0x139   : > { %v324_v43 = vpop.f32.mrf.mxu1 }
 0x13a   : > { %430 = vrot.lane.b32.xlu2 %v324_v43, %s1118_s7 }
 0x13b   : > { %v414_v44 = vpop.f32.mrf.mxu3 }
 0x13c   : > { %462 = vrot.lane.b32.xlu0 %v414_v44, %s1119_s23 }
 0x13f   : > { %v375_v45 = vpop.f32.mrf.mxu2 }
 0x141   : > { %v327_v46 = vpop.f32.mrf.mxu1 }
 0x142   : > { %450 = vrot.lane.b32.xlu2 %v375_v45, %s1117_s5  ;;  %v231_v45 = vsub.f32 1.0, %v1005_v41 }
 0x143   : > { %v417_v47 = vpop.f32.mrf.mxu3 }
 0x144   : > { %464 = vrot.lane.b32.xlu1 %v417_v47, %s1119_s23  ;;  %432 = vrot.lane.b32.xlu0 %v327_v46, %s1118_s7 }
 0x147   : > { %v378_v48 = vpop.f32.mrf.mxu2 }
 0x149   : > { %v330_v49 = vpop.f32.mrf.mxu1 }
 0x14b   : > { %v420_v50 = vpop.f32.mrf.mxu3 }
 0x14c   : > { %434 = vrot.lane.b32.xlu1 %v330_v49, %s1118_s7  ;;  %466 = vrot.lane.b32.xlu2 %v420_v50, %s1119_s23  ;;  %v235_v50 = vmul.f32 %v231_v45, %v1243_v1 }
 0x14f   : > { %v639_v52 = vpop.f32.mrf.mxu2 }
 0x151   : > { %v333_v51 = vpop.f32.mrf.mxu1 }
 0x153   : > { %v423_v53 = vpop.f32.mrf.mxu3 }
 0x154   : > { %468 = vrot.lane.b32.xlu0 %v423_v53, %s1119_s23  ;;  %452 = vrot.lane.b32.xlu1 %v378_v48, %s1117_s5 }
 0x155   : > { %436 = vrot.lane.b32.xlu2 %v333_v51, %s1118_s7 }
 0x157   : > { %v642_v56 = vpop.f32.mrf.mxu2 }
 0x159   : > { %v594_v54 = vpop.f32.mrf.mxu1 }
 0x15b   : > { %v684_v55 = vpop.f32.mrf.mxu3 }
 0x15c   : > { %732 = vrot.lane.b32.xlu1 %v684_v55, %s1119_s23  ;;  %700 = vrot.lane.b32.xlu0 %v594_v54, %s1118_s7  ;;  %v549_v54 = vpop.f32.mrf.mxu0  ;;  %v232_v55 = vsub.f32 1.0, %v1007_v2 }
 0x15d   : > { %716 = vrot.lane.b32.xlu2 %v639_v52, %s1117_s5 }
 0x15f   : > { %v645_v59 = vpop.f32.mrf.mxu2 }
 0x161   : > { %v597_v57 = vpop.f32.mrf.mxu1 }
 0x163   : > { %v687_v58 = vpop.f32.mrf.mxu3 }
 0x164   : > { %702 = vrot.lane.b32.xlu1 %v597_v57, %s1118_s7  ;;  %718 = vrot.lane.b32.xlu0 %v642_v56, %s1117_s5 }
 0x167   : > { %v648_v62 = vpop.f32.mrf.mxu2 }
 0x169   : > { %v600_v60 = vpop.f32.mrf.mxu1 }
 0x16a   : > { %704 = vrot.lane.b32.xlu2 %v600_v60, %s1118_s7 }
 0x16b   : > { %v690_v61 = vpop.f32.mrf.mxu3 }
 0x16c   : > { %720 = vrot.lane.b32.xlu1 %v645_v59, %s1117_s5 }
 0x171   : > { %v603_v63 = vpop.f32.mrf.mxu1 }
 0x172   : > { %722 = vrot.lane.b32.xlu2 %v648_v62, %s1117_s5  ;;  %706 = vrot.lane.b32.xlu0 %v603_v63, %s1118_s7  ;;  %s1489_s5 = scalar_lea.vmem [#allocation5], %s868_s4  ;;  %v1009_v63 = vpop.eup %1008  ;;  %s940_s4 = sshll.u32 %s1165_s16, 4 }
 0x173   : > { %v693_v8 = vpop.f32.mrf.mxu3  ;;  %s784_s17 = scalar_lea.hbm %s1578_s3, %s940_s4  ;;  %s785_s19 = sshll.u32 %s1489_s5, 4  ;;  %s786_s19 = int_to_ptr.vmem [resolvable:$true] %s785_s19 }
 0x174   : > { %738 = vrot.lane.b32.xlu1 %v693_v8, %s1119_s23  ;;  %s787_s16 = sshll.u32 %s784_s17, 4  ;;  %s788_s16 = int_to_ptr.hbm [resolvable:$true] %s787_s16 }
 0x175   : > { %s1060_s22 = sshra.s32 %s788_s16, 4  ;;  %s1061_s22 = int_to_ptr.hbm [resolvable:$true] %s1060_s22 }
 0x176   : > { %s1062_s27 = scalar_lea.hbm %s1061_s22, 64  ;;  %p1067_p1 = scmp.lt.s32.totalorder %s1061_s22, %s1578_s3 }
 0x177   : > { %p1063_p6 = scmp.ne.s32.totalorder %s1061_s22, %s1062_s27  ;;  %p1068_p2 = scmp.lt.s32.totalorder %s1066_s29, %s1062_s27 }
 0x179   : > { %p1064_p12 = pnand %p1063_p6, %p1193_p10  ;;  %p1069_p3 = por %p1068_p2, %p1067_p1 }
 0x17a   : > { %734 = vrot.lane.b32.xlu2 %v687_v58, %s1119_s23  ;;  %736 = vrot.lane.b32.xlu0 %v690_v61, %s1119_s23  ;;  %v236_v61 = vmul.f32 %v232_v55, %v1240_v0 }
 0x17b   : > { %p1065_p13 = pneg %p1064_p12 }
 0x17d   : > { %p1070_p4 = pnand %p1069_p3, %p1065_p13 }
 0x194   : > { %v431_v10 = vpop.permute.xlu2 %430 }
 0x195   : > { %v474_v22 = vsel %vm237_vm0, %v279_v13, %v431_v10 }
 0x19c   : > { %v451_v14 = vpop.permute.xlu2 %450 }
 0x1a2   : > { %v447_v16 = vpop.permute.xlu0 %446 }
 0x1a3   : > { %v479_v23 = vsel %vm478_vm1, %v474_v22, %v447_v16  ;;  %v512_v16 = vsub.f32 1.0, %v1009_v63 }
 0x1a6   : > { %v467_v18 = vpop.permute.xlu2 %466 }
 0x1aa   : > { %v449_v21 = vpop.permute.xlu1 %448 }
 0x1ae   : > { %v463_v24 = vpop.permute.xlu0 %462 }
 0x1af   : > { %v484_v25 = vsel %vm483_vm2, %v479_v23, %v463_v24  ;;  %v437_v30 = vpop.permute.xlu2 %436  ;;  %v1011_v23 = vpop.eup %1010 }
 0x1b0   : > { %v488_v27 = vadd.f32 %v484_v25, %v1475_v12  ;;  %v477_v56 = vsel %vm237_vm0, %v288_v42, %v437_v30 }
 0x1b2   : > { %v492_v29 = vmul.f32 %v1001_v19, %v488_v27  ;;  %v552_v19 = vpop.f32.mrf.mxu0  ;;  %v513_v27 = vsub.f32 1.0, %v1011_v23 }
 0x1b4   : > { %v496_v32 = vadd.f32 %v492_v29, %v233_v26 }
 0x1b6   : > { %500 = vst [vmem:[%s1489_s5] sm:$0xff] %v496_v32  ;;  %v465_v33 = vpop.permute.xlu1 %464  ;;  %v433_v35 = vpop.permute.xlu0 %432 }
 0x1b7   : > { %v475_v3 = vsel %vm237_vm0, %v282_v17, %v433_v35  ;;  %v717_v40 = vpop.permute.xlu2 %716 }
 0x1b8   : > { %v480_v36 = vsel %vm478_vm1, %v475_v3, %v449_v21  ;;  %v516_v21 = vmul.f32 %v512_v16, %v1301_v7  ;;  %v517_v7 = vmul.f32 %v513_v27, %v1292_v6 }
 0x1b9   : > { %v485_v37 = vsel %vm483_vm2, %v480_v36, %v465_v33  ;;  %v1013_v36 = vpop.eup %1012 }
 0x1ba   : > { %v489_v39 = vadd.f32 %v485_v37, %v1473_v11  ;;  %v555_v33 = vpop.f32.mrf.mxu0 }
 0x1bc   : > { %v493_v43 = vmul.f32 %v1003_v31, %v489_v39  ;;  %v515_v39 = vsub.f32 1.0, %v1013_v36 }
 0x1be   : > { %v497_v44 = vadd.f32 %v493_v43, %v234_v38  ;;  %v435_v46 = vpop.permute.xlu1 %434  ;;  %v519_v43 = vmul.f32 %v515_v39, %v1276_v4 }
 0x1bf   : > { %v476_v47 = vsel %vm237_vm0, %v285_v28, %v435_v46 }
 0x1c0   : > { %501 = vst [vmem:[%s1489_s5 + $0x10] sm:$0xff] %v497_v44  ;;  %v481_v48 = vsel %vm478_vm1, %v476_v47, %v451_v14 }
 0x1c1   : > { %v486_v49 = vsel %vm483_vm2, %v481_v48, %v467_v18 }
 0x1c2   : > { %v490_v51 = vadd.f32 %v486_v49, %v1471_v9  ;;  %v558_v37 = vpop.f32.mrf.mxu0 }
 0x1c4   : > { %v494_v52 = vmul.f32 %v1005_v41, %v490_v51  ;;  %v1504_v53 = vpop.permute.xlu2 %704 }
 0x1c5   : > { %v746_v47 = vsel %vm237_vm0, %v555_v33, %v1504_v53 }
 0x1c6   : > { %v498_v57 = vadd.f32 %v494_v52, %v235_v50  ;;  %v469_v58 = vpop.permute.xlu0 %468  ;;  %v453_v59 = vpop.permute.xlu1 %452 }
 0x1c7   : > { %v482_v60 = vsel %vm478_vm1, %v477_v56, %v453_v59 }
 0x1c8   : > { %502 = vst [vmem:[%s1489_s5 + $0x20] sm:$0xff] %v498_v57  ;;  %v487_v1 = vsel %vm483_vm2, %v482_v60, %v469_v58 }
 0x1c9   : > { %v491_v62 = vadd.f32 %v487_v1, %v1478_v15 }
 0x1cb   : > { %v495_v8 = vmul.f32 %v1007_v2, %v491_v62 }
 0x1cc   : > { %v723_v13 = vpop.permute.xlu2 %722 }
 0x1cd   : > { %v499_v10 = vadd.f32 %v495_v8, %v236_v61 }
 0x1ce   : > { %v733_v14 = vpop.permute.xlu1 %732  ;;  %v701_v17 = vpop.permute.xlu0 %700 }
 0x1cf   : > { %503 = vst [vmem:[%s1489_s5 + $0x30] sm:$0xff] %v499_v10  ;;  %v744_v18 = vsel %vm237_vm0, %v549_v54, %v701_v17 }
 0x1d0   : > { %v748_v20 = vsel %vm478_vm1, %v744_v18, %v717_v40 }
 0x1d1   : > { %v752_v0 = vsel %vm483_vm2, %v748_v20, %v733_v14 }
 0x1d2   : > { %v756_v22 = vadd.f32 %v752_v0, %v1475_v12 }
 0x1d4   : > { %v760_v24 = vmul.f32 %v1009_v63, %v756_v22  ;;  %v735_v30 = vpop.permute.xlu2 %734 }
 0x1d6   : > { %v764_v25 = vadd.f32 %v760_v24, %v516_v21  ;;  %v703_v26 = vpop.permute.xlu1 %702  ;;  %v719_v28 = vpop.permute.xlu0 %718 }
 0x1d7   : > { %v745_v29 = vsel %vm237_vm0, %v552_v19, %v703_v26 }
 0x1d8   : > { %768 = vst [vmem:[%s1489_s5 + $0x8] sm:$0xff] %v764_v25  ;;  %v749_v31 = vsel %vm478_vm1, %v745_v29, %v719_v28 }
 0x1d9   : > { %v753_v32 = vsel %vm483_vm2, %v749_v31, %v735_v30 }
 0x1da   : > { %v757_v12 = vadd.f32 %v753_v32, %v1473_v11  ;;  %v1015_v11 = vpop.eup %1014 }
 0x1db   : > { %v514_v46 = vsub.f32 1.0, %v1015_v11 }
 0x1dc   : > { %v761_v34 = vmul.f32 %v1011_v23, %v757_v12 }
 0x1de   : > { %v765_v35 = vadd.f32 %v761_v34, %v517_v7  ;;  %v721_v3 = vpop.permute.xlu1 %720 }
 0x1df   : > { %v750_v48 = vsel %vm478_vm1, %v746_v47, %v721_v3 }
 0x1e0   : > { %769 = vst [vmem:[%s1489_s5 + $0x18] sm:$0xff] %v765_v35 }
 0x1e4   : > { %v707_v38 = vpop.permute.xlu0 %706 }
 0x1e5   : > { %v747_v40 = vsel %vm237_vm0, %v558_v37, %v707_v38 }
 0x1e6   : > { %v739_v41 = vpop.permute.xlu1 %738  ;;  %v751_v6 = vsel %vm478_vm1, %v747_v40, %v723_v13 }
 0x1e7   : > { %v755_v42 = vsel %vm483_vm2, %v751_v6, %v739_v41 }
 0x1e8   : > { %v759_v44 = vadd.f32 %v755_v42, %v1478_v15  ;;  %v518_v15 = vmul.f32 %v514_v46, %v1283_v5 }
 0x1ea   : > { %v763_v45 = vmul.f32 %v1013_v36, %v759_v44 }
 0x1ec   : > { %v767_v49 = vadd.f32 %v763_v45, %v519_v43  ;;  %v737_v2 = vpop.permute.xlu0 %736 }
 0x1ed   : > { %v754_v4 = vsel %vm483_vm2, %v750_v48, %v737_v2 }
 0x1ee   : > { %771 = vst [vmem:[%s1489_s5 + $0x38] sm:$0xff] %v767_v49  ;;  %v758_v50 = vadd.f32 %v754_v4, %v1471_v9 }
 0x1f0   : > { %v762_v51 = vmul.f32 %v1015_v11, %v758_v50 }
 0x1f2   : > { %v766_v52 = vadd.f32 %v762_v51, %v518_v15 }
 0x1f4   : > { %770 = vst [vmem:[%s1489_s5 + $0x28] sm:$0xff] %v766_v52 }
 0x1f5   : > { %1073 = shalt.err (!%p1070_p4)
}
 0x1f6   : > { %s1121_s30 = smov 256   ;;  %s1122_s8 = smov 2048  }
 0x1f7   : > { %s1123_s9 = smov 16  }
 0x1f8   : > { %943 = dma.vmem_to_hbm [thread:$0]  (%p1193_p10), %s786_s19, 1024, %s788_s16, %s773_s20, %s1121_s30, %s1122_s8, %s1123_s9  }
 0x1f9 PF: > { %p954_p5 = scmp.ge.s32.totalorder %s1112_s15, 2  ;;  %s802_s11 = sand.u32 1, %s1100_s12  }
 0x1fa   : > { %s803_s5 = scalar_lea.sflag [#allocation4], %s802_s11 }
 0x1fb   : > { %p950_p7 = pnand %p954_p5, %p1197_p11 }
 0x1fd   : > { %p951_p8 = pneg %p950_p7 }
 0x1ff   : > { %1095 = dma.done.wait (%p951_p8), %s803_s5, 1024  }
 0x200   : > { %1097 = vsyncadd (%p951_p8), %s803_s5, 4294966272  ;;  %p16_p9 = scmp.ge.s32.totalorder %s1169_s18, 10   ;;  %s1584_s12 = smov %s1104_s13 }
 0x201   : > { %s1585_s13 = smov %s1108_s14  ;;  %s1586_s14 = smov %s1181_s21 }
 0x202   : > { %s1587_s15 = smov %s1169_s18  ;;  %18 = sbr.rel (!%p16_p9) target bundleno = 5 (0x5), region = 77 }
 0x207   :  { %809 = vsyncpa [#allocation3], 1 }
 0x208   :  { %811 = vsyncpa [#allocation3 + $0x1], 1 }
 0x209   :  { %812 = vsyncpa [#allocation4], 1 }
 0x20a   :  { %814 = vsyncpa [#allocation4 + $0x1], 1 }

</bundles_post_ra>
